<compile_context>
chip_gen: v6e
topology: v6e:2x2x1
jax: 0.10.0
libtpu: 0.0.40
codegen_flags: <defaults>
</compile_context>

<pallas_src>
import functools

import jax
import jax.numpy as jnp
from jax.experimental import pallas as pl
from jax.experimental.pallas import tpu as pltpu


def _symmetry_kernel(a_ref, x_ref, w_ref, b_ref, o_ref, *, apply_a_to_input):
    """One batch tile per grid step.

    a_ref: (N, N)       f32  averaged one-hot permutation matrix A = (1/P) sum_p P_p
    x_ref: (TB, N, D)   f32  input rows for this batch tile
    w_ref: (D, Hp)      f32  inner Linear weight (feature dim padded to Hp)
    b_ref: (1, Hp)      f32  inner Linear bias   (padded)
    o_ref: (TB, N, Hp)  f32  output tile (lane-dense, Hp % 128 == 0)
    """
    TB, N, D = x_ref.shape
    Hp = w_ref.shape[1]
    # Broadcast A once per grid step (hoisted; not re-materialized per batch).
    a_b = jnp.broadcast_to(a_ref[...], (TB, N, N))

    if apply_a_to_input:
        # Symmetrize on the (narrower) input side, then one big MXU GEMM over
        # the whole batch tile and a single lane-dense full-tile store.
        z = jnp.einsum("bij,bjd->bid", a_b, x_ref[...],
                       preferred_element_type=jnp.float32)          # (TB, N, D)
        y = jnp.dot(z.reshape(TB * N, D), w_ref[...],
                    preferred_element_type=jnp.float32) + b_ref[...]  # (TB*N, Hp)
        o_ref[...] = y.reshape(TB, N, Hp).astype(o_ref.dtype)
    else:
        # Output side is narrower: big GEMM first, then batched symmetrization.
        y = jnp.dot(x_ref[...].reshape(TB * N, D), w_ref[...],
                    preferred_element_type=jnp.float32) + b_ref[...]  # (TB*N, Hp)
        out = jnp.einsum("bij,bjh->bih", a_b, y.reshape(TB, N, Hp),
                         preferred_element_type=jnp.float32)          # (TB, N, Hp)
        o_ref[...] = out.astype(o_ref.dtype)


def _pick_block_b(batch, seq, row_target=512):
    """Largest divisor of `batch` with TB*seq rows <= row_target (GEMM M-tile)."""
    cap = max(1, row_target // max(seq, 1))
    for cand in range(min(batch, cap), 0, -1):
        if batch % cand == 0:
            return cand
    return 1


def symmetry_model(x, w, b, perm_indices, *, block_b=None):
    """x: (B, N, D) f32, w: (D, H) f32, b: (H,) f32, perm_indices: (P, N) int32.

    perm_p(x)[:, i, :] = x[:, perm_indices[p, i], :].
    Returns (B, N, H) f32 == mean_p Linear(perm_p(x)).
    """
    B, N, D = x.shape
    H = w.shape[1]

    # Lane-dense output: pad feature dim to a multiple of 128 (sliced back below).
    Hp = ((H + 127) // 128) * 128
    w_p = jnp.pad(w.astype(jnp.float32), ((0, 0), (0, Hp - H)))
    b_p = jnp.pad(b.astype(jnp.float32), (0, Hp - H)).reshape(1, Hp)

    # Averaged one-hot permutation matrix — a constant derived from the
    # module's perms (analogous to a weight): A[i, j] = (1/P) sum_p [perm_p[i] == j].
    a = jnp.mean(jax.nn.one_hot(perm_indices, N, dtype=jnp.float32), axis=0)
    # TODO(synk): for large N the dense (N, N) matrix A is O(N^2); tile it or
    #             replace the A-matmul with P in-VMEM row gathers.

    TB = block_b if block_b is not None else _pick_block_b(B, N)
    assert B % TB == 0, "batch block must divide B"
    grid = (B // TB,)

    # Apply A on the narrower feature side to minimize the (N, N) matmul cost.
    apply_a_to_input = D <= Hp
    kernel = functools.partial(_symmetry_kernel, apply_a_to_input=apply_a_to_input)

    out = pl.pallas_call(
        kernel,
        out_shape=jax.ShapeDtypeStruct((B, N, Hp), jnp.float32),
        grid_spec=pltpu.PrefetchScalarGridSpec(
            num_scalar_prefetch=0,
            grid=grid,
            in_specs=[
                pl.BlockSpec((N, N), lambda i: (0, 0)),         # A : VMEM-resident
                pl.BlockSpec((TB, N, D), lambda i: (i, 0, 0)),  # x : batch tile
                pl.BlockSpec((D, Hp), lambda i: (0, 0)),        # W : VMEM-resident
                pl.BlockSpec((1, Hp), lambda i: (0, 0)),        # b : VMEM-resident
            ],
            out_specs=pl.BlockSpec((TB, N, Hp), lambda i: (i, 0, 0)),
        ),
        compiler_params=pltpu.CompilerParams(
            # Batch tiles are independent -> shard across the 2 TCs on v7x.
            dimension_semantics=("parallel",),
            # Double-buffered x/out tiles + resident W/b/A fit comfortably;
            # 32 MiB respects v7x's smaller (64 MiB physical) VMEM.
            vmem_limit_bytes=32 * 1024 * 1024,
        ),
    )(a, x, w_p, b_p)

    return out[:, :, :H]


def _reference(x, w, b, perm_indices):
    """Pure-JAX mirror of SymmetryModel.forward with a Linear inner model."""
    outs = []
    for p in range(perm_indices.shape[0]):
        xp = x[:, perm_indices[p], :]          # perm along the sequence axis
        outs.append(xp @ w + b)                # row-wise Linear
    return jnp.mean(jnp.stack(outs, axis=0), axis=0)


if __name__ == "__main__":
    B, N, D, H, P = 2, 8, 32, 16, 4
    key = jax.random.PRNGKey(0)
    kx, kw, kb, kp = jax.random.split(key, 4)
    x = jax.random.normal(kx, (B, N, D), dtype=jnp.float32)
    w = jax.random.normal(kw, (D, H), dtype=jnp.float32) * 0.1
    b = jax.random.normal(kb, (H,), dtype=jnp.float32) * 0.1
    perm_keys = jax.random.split(kp, P)
    perm_indices = jnp.stack(
        [jax.random.permutation(k, N) for k in perm_keys]
    ).astype(jnp.int32)

    out = symmetry_model(x, w, b, perm_indices)
    out = jax.block_until_ready(out)

    ref = _reference(x, w, b, perm_indices)
    assert out.shape == (B, N, H)
    assert jnp.allclose(out, ref, atol=1e-4, rtol=1e-4), "mismatch vs reference"

    print("KERNEL_OK")
</pallas_src>

<mosaic_0001>
module attributes {stable_mosaic.version = 11 : i64} {
  func.func @_symmetry_kernel(%arg0: i32, %arg1: memref<8x8xf32, #tpu.memory_space<vmem>>, %arg2: memref<2x8x32xf32, #tpu.memory_space<vmem>>, %arg3: memref<32x128xf32, #tpu.memory_space<vmem>>, %arg4: memref<1x128xf32, #tpu.memory_space<vmem>>, %arg5: memref<2x8x128xf32, #tpu.memory_space<vmem>>) attributes {dimension_semantics = [#tpu.dimension_semantics<parallel>], iteration_bounds = array<i64: 1>, scalar_prefetch = 0 : i64, scratch_operands = 0 : i64, tpu.core_type = #tpu.core_type<tc>, window_params = [{pipeline_mode = #tpu.pipeline_mode<synchronous>, transform_indices = @transform_0, window_bounds = array<i64: 8, 8>}, {transform_indices = @transform_1, window_bounds = array<i64: 2, 8, 32>}, {pipeline_mode = #tpu.pipeline_mode<synchronous>, transform_indices = @transform_2, window_bounds = array<i64: 32, 128>}, {pipeline_mode = #tpu.pipeline_mode<synchronous>, transform_indices = @transform_3, window_bounds = array<i64: 1, 128>}, {transform_indices = @transform_4, window_bounds = array<i64: 2, 8, 128>}]} {
    %c0 = arith.constant 0 : index
    %c0_0 = arith.constant 0 : index
    %0 = vector.load %arg1[%c0, %c0_0] : memref<8x8xf32, #tpu.memory_space<vmem>>, vector<8x8xf32>
    %1 = vector.shape_cast %0 : vector<8x8xf32> to vector<1x8x8xf32>
    %2 = vector.broadcast %1 : vector<1x8x8xf32> to vector<2x8x8xf32>
    %c0_1 = arith.constant 0 : index
    %c0_2 = arith.constant 0 : index
    %c0_3 = arith.constant 0 : index
    %3 = vector.load %arg2[%c0_1, %c0_2, %c0_3] : memref<2x8x32xf32, #tpu.memory_space<vmem>>, vector<2x8x32xf32>
    "tpu.trace_start"() <{level = 10 : i32, message = "bij,bjd->bid"}> : () -> ()
    %cst = arith.constant dense<0.000000e+00> : vector<2x8x32xf32>
    %4 = tpu.matmul %2, %3, %cst {dimension_numbers = #tpu.dot_dimension_numbers<[2], [1], [1], [2], [0, 0, 0, 1, 1, 2], [0], [0]>} : vector<2x8x8xf32>, vector<2x8x32xf32>, vector<2x8x32xf32> -> vector<2x8x32xf32>
    "tpu.trace_stop"() : () -> ()
    %5 = vector.shape_cast %4 : vector<2x8x32xf32> to vector<16x32xf32>
    %c0_4 = arith.constant 0 : index
    %c0_5 = arith.constant 0 : index
    %6 = vector.load %arg3[%c0_4, %c0_5] : memref<32x128xf32, #tpu.memory_space<vmem>>, vector<32x128xf32>
    %cst_6 = arith.constant dense<0.000000e+00> : vector<16x128xf32>
    %7 = tpu.matmul %5, %6, %cst_6 {dimension_numbers = #tpu.dot_dimension_numbers<[1], [0], [0], [1], [0, 0, 1, 1], [], []>} : vector<16x32xf32>, vector<32x128xf32>, vector<16x128xf32> -> vector<16x128xf32>
    %c0_7 = arith.constant 0 : index
    %c0_8 = arith.constant 0 : index
    %8 = vector.load %arg4[%c0_7, %c0_8] : memref<1x128xf32, #tpu.memory_space<vmem>>, vector<1x128xf32>
    %9 = vector.broadcast %8 : vector<1x128xf32> to vector<16x128xf32>
    %10 = arith.addf %7, %9 : vector<16x128xf32>
    %11 = vector.shape_cast %10 : vector<16x128xf32> to vector<2x8x128xf32>
    %c0_9 = arith.constant 0 : index
    %c0_10 = arith.constant 0 : index
    %c0_11 = arith.constant 0 : index
    %12 = vector.load %arg5[%c0_9, %c0_10, %c0_11] : memref<2x8x128xf32, #tpu.memory_space<vmem>>, vector<2x8x128xf32>
    tpu.vector_store %arg5[%c0_9, %c0_10, %c0_11], %11 {strides = array<i32>} : memref<2x8x128xf32, #tpu.memory_space<vmem>>, vector<2x8x128xf32>,
    return
  }
  func.func @transform_0(%arg0: i32) -> (i32, i32) {
    %c0_i32 = arith.constant 0 : i32
    %c0_i32_0 = arith.constant 0 : i32
    %c0_i32_1 = arith.constant 0 : i32
    return %c0_i32, %c0_i32_0 : i32, i32
  }
  func.func @transform_1(%arg0: i32) -> (i32, i32, i32) {
    %c0_i32 = arith.constant 0 : i32
    %c0_i32_0 = arith.constant 0 : i32
    %c0_i32_1 = arith.constant 0 : i32
    return %arg0, %c0_i32, %c0_i32_0 : i32, i32, i32
  }
  func.func @transform_2(%arg0: i32) -> (i32, i32) {
    %c0_i32 = arith.constant 0 : i32
    %c0_i32_0 = arith.constant 0 : i32
    %c0_i32_1 = arith.constant 0 : i32
    return %c0_i32, %c0_i32_0 : i32, i32
  }
  func.func @transform_3(%arg0: i32) -> (i32, i32) {
    %c0_i32 = arith.constant 0 : i32
    %c0_i32_0 = arith.constant 0 : i32
    %c0_i32_1 = arith.constant 0 : i32
    return %c0_i32, %c0_i32_0 : i32, i32
  }
  func.func @transform_4(%arg0: i32) -> (i32, i32, i32) {
    %c0_i32 = arith.constant 0 : i32
    %c0_i32_0 = arith.constant 0 : i32
    %c0_i32_1 = arith.constant 0 : i32
    return %arg0, %c0_i32, %c0_i32_0 : i32, i32, i32
  }
}

</mosaic_0001>

<bundles_post_ra>
// kernel: tpu_custom_call.1
= control target key start
LH: loop header
LB: loop body
LE: loop exit
PB: predicated region body
PF: predicated region fallthrough
CT: control target
= control target key end

     0   :  { %9 = vsyncpa [#allocation3], 0  ;;  %s504_s0 = inlined_call_operand.hbm [shape: f32[8,8], index: 0, kind: input, shape index: {}]   ;;  %s505_s1 = inlined_call_operand.hbm [shape: f32[2,8,32], index: 1, kind: input, shape index: {}]   ;;  %s506_s2 = inlined_call_operand.hbm [shape: f32[32,128], index: 2, kind: input, shape index: {}]   ;;  %s507_s3 = inlined_call_operand.vmem [shape: f32[1,128], index: 3, kind: input, shape index: {}]   ;;  %s508_s4 = inlined_call_operand.hbm [shape: f32[2,8,128], index: 4, kind: output, shape index: {}]  }
   0x1   :  { %10 = vsyncpa [#allocation6], 0 }
   0x2   :  { %11 = vsyncpa [#allocation4], 0  ;;  %s447_s15 = smov [#allocation5]  }
   0x3   :  { %s27_s16 = sshll.u32 %s447_s15, 4  ;;  %s28_s16 = int_to_ptr.vmem [resolvable:$true] %s27_s16 }
   0x4   :  { %s369_s17 = scalar_lea.vmem %s28_s16, 256  ;;  %p374_p1 = scmp.lt.s32.totalorder %s28_s16, %s28_s16 }
   0x5   :  { %p370_p0 = scmp.ne.s32.totalorder %s28_s16, %s369_s17  ;;  %p375_p2 = scmp.lt.s32.totalorder %s369_s17, %s369_s17 }
   0x7   :  { %p376_p3 = por %p375_p2, %p374_p1 }
   0x9   :  { %p377_p4 = pnand %p376_p3, %p370_p0 }
   0xb   :  { %380 = shalt.err (!%p377_p4)
}
   0xc   :  { %s448_s18 = smov 128   ;;  %s449_s19 = smov 8  }
   0xd   :  { %33 = dma.hbm_to_vmem [thread:$0]  %s505_s1, 256, %s28_s16, [#allocation6], %s448_s18, %s448_s18, %s449_s19  }
   0xe   :  { %s450_s22 = smov [#allocation2]   ;;  %s451_s24 = smov [#allocation7]  }
   0xf   :  { %s18_s23 = sshll.u32 %s450_s22, 4  ;;  %s39_s25 = sshll.u32 %s451_s24, 4  ;;  %s19_s23 = int_to_ptr.vmem [resolvable:$true] %s18_s23  ;;  %s40_s25 = int_to_ptr.vmem [resolvable:$true] %s39_s25 }
  0x10   :  { %s389_s26 = scalar_lea.vmem %s19_s23, 128  ;;  %p394_p6 = scmp.lt.s32.totalorder %s19_s23, %s19_s23 }
  0x11   :  { %p390_p5 = scmp.ne.s32.totalorder %s19_s23, %s389_s26  ;;  %p395_p7 = scmp.lt.s32.totalorder %s389_s26, %s389_s26 }
  0x13   :  { %p396_p8 = por %p395_p7, %p394_p6 }
  0x15   :  { %p397_p9 = pnand %p396_p8, %p390_p5 }
  0x17   :  { %400 = shalt.err (!%p397_p9)
}
  0x18   :  { %21 = dma.hbm_to_vmem [thread:$0]  %s504_s0, 128, %s19_s23, [#allocation3]  }
  0x19   :  { %s409_s29 = scalar_lea.vmem %s40_s25, 512  ;;  %p414_p11 = scmp.lt.s32.totalorder %s40_s25, %s40_s25 }
  0x1a   :  { %p410_p10 = scmp.ne.s32.totalorder %s40_s25, %s409_s29  ;;  %p415_p12 = scmp.lt.s32.totalorder %s409_s29, %s409_s29 }
  0x1c   :  { %p416_p13 = por %p415_p12, %p414_p11 }
  0x1e   :  { %p417_p0 = pnand %p416_p13, %p410_p10 }
  0x20   :  { %420 = shalt.err (!%p417_p0)
}
  0x21   :  { %45 = dma.hbm_to_vmem [thread:$0]  %s506_s2, 512, %s40_s25, [#allocation6], %s448_s18, %s448_s18, %s449_s19  }
  0x22   :  { %441 = dma.done.wait [#allocation3], 128  }
  0x23   :  { %442 = vsyncadd [#allocation3], 4294967168 }
  0x24   :  { %443 = dma.done.wait [#allocation6], 768  }
  0x25   :  { %444 = vsyncadd [#allocation6], 4294966528  ;;  %v452_v0 = vmov 0.0   ;;  %vm453_vm0 = vmmov 0   ;;  %vm60_vm1 = vcmask 64512   ;;  %v58_v1 = vld [vmem:[#allocation5] sm:$0xff] }
  0x26   :  { %332 = vmatprep.subr.mxu1 %v452_v0  ;;  %334 = vmatprep.mubr.msk.f32.mxu1 %vm453_vm0, %v452_v0  ;;  %v57_v2 = vld [vmem:[#allocation2] sm:$0xff]  ;;  %v59_v3 = vld [vmem:[#allocation5 + $0x8] sm:$0xff]  ;;  %v206_v5 = vld [vmem:[#allocation7 + $0x10] sm:$0xff]  ;;  %vm215_vm2 = vcmask 261120   ;;  %s454_s5 = smov [#allocation8]  }
  0x27   :  { %333 = vmatpush3.msra.mxu1 %v58_v1  ;;  %v207_v4 = vld [vmem:[#allocation7 + $0x18] sm:$0xff]  ;;  %v205_v6 = vld [vmem:[#allocation7 + $0x8] sm:$0xff]  ;;  %v204_v7 = vld [vmem:[#allocation7] sm:$0xff]  ;;  %s304_s6 = sshll.u32 %s454_s5, 4  ;;  %s305_s6 = int_to_ptr.vmem [resolvable:$true] %s304_s6 }
  0x28   :  { %335 = vmatmul.mubr.msk.f32.vlgmr.msra.gmra.mxu1 %vm60_vm1, %v57_v2  ;;  %337 = vmatprep.subr.mxu1 %v452_v0  ;;  %v319_v12 = vld [vmem:[%s507_s3] ss:$0 sm:$0xff]  ;;  %s421_s7 = scalar_lea.vmem %s305_s6, 256  ;;  %p426_p2 = scmp.lt.s32.totalorder %s305_s6, %s305_s6 }
  0x29   :  { %338 = vmatpush3.msra.mxu1 %v59_v3  ;;  %339 = vmatprep.mubr.msk.f32.mxu1 %vm453_vm0, %v452_v0  ;;  %p422_p1 = scmp.ne.s32.totalorder %s305_s6, %s421_s7  ;;  %p427_p3 = scmp.lt.s32.totalorder %s421_s7, %s421_s7 }
  0x2a   :  { %342 = vmatprep.subr.mxu0 %v207_v4 }
  0x2b   :  { %343 = vmatpush3.msra.mxu0 %v207_v4  ;;  %p428_p4 = por %p427_p3, %p426_p2 }
  0x2c   :  { %340 = vmatmul.mubr.msk.f32.vlgmr.msra.gmra.mxu1 %vm60_vm1, %v57_v2  ;;  %344 = vmatprep.subr.mxu0 %v206_v5 }
  0x2d   :  { %345 = vmatpush3.msra.mxu0 %v206_v5  ;;  %p429_p5 = pnand %p428_p4, %p422_p1 }
  0x2e   :  { %346 = vmatprep.subr.mxu0 %v205_v6 }
  0x2f   :  { %347 = vmatpush3.msra.mxu0 %v205_v6 }
  0x30   :  { %348 = vmatprep.subr.mxu0 %v204_v7 }
  0x31   :  { %349 = vmatpush3.msra.mxu0 %v204_v7 }
  0xe8   :  { %v130_v8 = vpop.f32.mrf.mxu1 }
  0xe9   :  { %350 = vmatprep.mubr.msk.f32.mxu0 %vm215_vm2, %v130_v8 }
  0xea   :  { %v336_v9 = vpop.f32.mrf.mxu1 }
  0xec   :  { %v200_v10 = vpop.f32.mrf.mxu1 }
  0xed   :  { %351 = vmatmul.mubr.msk.f32.vlgmr.msra.gmra.mxu0 %vm215_vm2, %v200_v10 }
  0xee   :  { %v341_v11 = vpop.f32.mrf.mxu1 }
 0x1ad   :  { %v352_v13 = vpop.f32.mrf.mxu0 }
 0x1ae   :  { %v294_v14 = vadd.f32 %v352_v13, %v319_v12 }
 0x1af   :  { %v288_v15 = vpop.f32.mrf.mxu0 }
 0x1b0   :  { %298 = vst [vmem:[#allocation8 + $0x8] sm:$0xff] %v294_v14  ;;  %v289_v16 = vadd.f32 %v319_v12, %v288_v15 }
 0x1b2   :  { %297 = vst [vmem:[#allocation8] sm:$0xff] %v289_v16 }
 0x1b3   :  { %432 = shalt.err (!%p429_p5)
}
 0x1b4   :  { %310 = dma.vmem_to_hbm [thread:$0]  %s305_s6, 256, %s508_s4, [#allocation4], %s448_s18, %s448_s18, %s449_s19  }
 0x1b5   :  { %445 = dma.done.wait [#allocation4], 256  }
 0x1b6   :  { %446 = vsyncadd [#allocation4], 4294967040 }
 0x1b7   :  { %314 = vsyncpa [#allocation3], 1 }
 0x1b8   :  { %315 = vsyncpa [#allocation6], 1 }
 0x1b9   :  { %316 = vsyncpa [#allocation4], 1 }

</bundles_post_ra>
